<compile_context>
chip_gen: v5e
topology: v5e:2x2
jax: 0.10.0
libtpu: 0.0.40
codegen_flags: <defaults>
</compile_context>

<pallas_src>
import jax
import jax.numpy as jnp
from jax.experimental import pallas as pl
from jax.experimental.pallas import tpu as pltpu


def dqn_kernel(x_ref, w1_ref, b1_ref, w2_ref, b2_ref, out_ref):
    # Layer 1 (both branches fused): bf16 MXU, f32 accumulate.
    x = x_ref[...].astype(w1_ref.dtype)                              # (tm, S) bf16
    h = jnp.dot(x, w1_ref[...], preferred_element_type=jnp.float32)  # (tm, 2H) f32
    h = jnp.maximum(h + b1_ref[...], 0.0)                            # bias+ReLU in f32

    # Layer 2: dueling combine already folded into w2/b2.
    h = h.astype(w2_ref.dtype)                                       # bf16 for MXU
    q = jnp.dot(h, w2_ref[...], preferred_element_type=jnp.float32)  # (tm, A) f32
    out_ref[...] = q + b2_ref[...]


def dqn_forward(state, packed, *, block_b=256):
    """state: (B, num_states) f32.  packed: dict from pack_params()."""
    B, S = state.shape
    H2 = packed["w1"].shape[1]
    A = packed["w2"].shape[1]

    tm = min(block_b, B)
    pad = (-B) % tm
    if pad:
        state = jnp.pad(state, ((0, pad), (0, 0)))
    Bp = B + pad

    out = pl.pallas_call(
        dqn_kernel,
        out_shape=jax.ShapeDtypeStruct((Bp, A), jnp.float32),
        grid_spec=pltpu.PrefetchScalarGridSpec(
            num_scalar_prefetch=0,
            grid=(Bp // tm,),
            in_specs=[
                pl.BlockSpec((tm, S), lambda i: (i, 0)),   # x: tiled over batch
                pl.BlockSpec((S, H2), lambda i: (0, 0)),   # w1: resident
                pl.BlockSpec((1, H2), lambda i: (0, 0)),   # b1: resident
                pl.BlockSpec((H2, A), lambda i: (0, 0)),   # w2: resident
                pl.BlockSpec((1, A), lambda i: (0, 0)),    # b2: resident
            ],
            out_specs=pl.BlockSpec((tm, A), lambda i: (i, 0)),
        ),
        compiler_params=pltpu.CompilerParams(
            dimension_semantics=("parallel",)),
    )(state, packed["w1"], packed["b1"], packed["w2"], packed["b2"])
    return out[:B]


def init_params(key, num_states, num_actions, hidden):
    """Deterministic synthetic init (weights stored as (in, out), f32)."""
    ks = jax.random.split(key, 8)

    def lin(kw, kb, fan_in, fan_out):
        bound = 1.0 / jnp.sqrt(fan_in)
        w = jax.random.uniform(kw, (fan_in, fan_out), jnp.float32, -bound, bound)
        b = jax.random.uniform(kb, (1, fan_out), jnp.float32, -bound, bound)
        return w, b

    wa1, ba1 = lin(ks[0], ks[1], num_states, hidden)
    wa2, ba2 = lin(ks[2], ks[3], hidden, num_actions)
    ws1, bs1 = lin(ks[4], ks[5], num_states, hidden)
    ws2, bs2 = lin(ks[6], ks[7], hidden, 1)
    return dict(wa1=wa1, ba1=ba1, wa2=wa2, ba2=ba2,
                ws1=ws1, bs1=bs1, ws2=ws2, bs2=bs2)


def pack_params(p, num_actions, weight_dtype=jnp.bfloat16):
    """Host-side one-time packing: fuse branches + fold dueling combine.

    q = v + (a - mean(a)) = h @ W2 + b2  with
      W2 = [[wa2 @ C], [ws2 @ 1_(1,A)]],  b2 = ba2 @ C + bs2,  C = I - 1/A.
    """
    A = num_actions
    C = jnp.eye(A, dtype=jnp.float32) - jnp.full((A, A), 1.0 / A, jnp.float32)

    w1 = jnp.concatenate([p["wa1"], p["ws1"]], axis=1)                 # (S, 2H)
    b1 = jnp.concatenate([p["ba1"], p["bs1"]], axis=1)                 # (1, 2H)
    w2 = jnp.concatenate([p["wa2"] @ C,                                # (H, A)
                          p["ws2"] @ jnp.ones((1, A), jnp.float32)],   # (H, A)
                         axis=0)                                       # (2H, A)
    b2 = p["ba2"] @ C + p["bs2"]                                       # (1, A)

    return dict(w1=w1.astype(weight_dtype), b1=b1.astype(jnp.float32),
                w2=w2.astype(weight_dtype), b2=b2.astype(jnp.float32))


def dqn_ref(state, p):
    """Pure-JAX f32 reference mirroring the PyTorch forward."""
    a = jnp.maximum(state @ p["wa1"] + p["ba1"], 0.0) @ p["wa2"] + p["ba2"]
    v = jnp.maximum(state @ p["ws1"] + p["bs1"], 0.0) @ p["ws2"] + p["bs2"]
    return v + (a - a.mean(axis=1, keepdims=True))


if __name__ == "__main__":
    B, NUM_STATES, NUM_ACTIONS, HIDDEN = 8, 16, 4, 32

    key = jax.random.PRNGKey(0)
    k_x, k_p = jax.random.split(key)
    state = jax.random.normal(k_x, (B, NUM_STATES), dtype=jnp.float32)
    params = init_params(k_p, NUM_STATES, NUM_ACTIONS, HIDDEN)
    packed = pack_params(params, NUM_ACTIONS)

    q = dqn_forward(state, packed)
    q = jax.block_until_ready(q)

    q_ref = dqn_ref(state, params)
    assert q.shape == (B, NUM_ACTIONS)
    # Loosened tolerance: weights are shipped to the kernel in bf16.
    assert jnp.allclose(q, q_ref, atol=2e-2, rtol=2e-2), \
        float(jnp.max(jnp.abs(q - q_ref)))

    print("KERNEL_OK")
</pallas_src>

<mosaic_0001>
module attributes {stable_mosaic.version = 11 : i64} {
  func.func @dqn_kernel(%arg0: i32, %arg1: memref<8x16xf32, #tpu.memory_space<vmem>>, %arg2: memref<16x64xbf16, #tpu.memory_space<vmem>>, %arg3: memref<1x64xf32, #tpu.memory_space<vmem>>, %arg4: memref<64x4xbf16, #tpu.memory_space<vmem>>, %arg5: memref<1x4xf32, #tpu.memory_space<vmem>>, %arg6: memref<8x4xf32, #tpu.memory_space<vmem>>) attributes {dimension_semantics = [#tpu.dimension_semantics<parallel>], iteration_bounds = array<i64: 1>, scalar_prefetch = 0 : i64, scratch_operands = 0 : i64, tpu.core_type = #tpu.core_type<tc>, window_params = [{transform_indices = @transform_0, window_bounds = array<i64: 8, 16>}, {pipeline_mode = #tpu.pipeline_mode<synchronous>, transform_indices = @transform_1, window_bounds = array<i64: 16, 64>}, {pipeline_mode = #tpu.pipeline_mode<synchronous>, transform_indices = @transform_2, window_bounds = array<i64: 1, 64>}, {pipeline_mode = #tpu.pipeline_mode<synchronous>, transform_indices = @transform_3, window_bounds = array<i64: 64, 4>}, {pipeline_mode = #tpu.pipeline_mode<synchronous>, transform_indices = @transform_4, window_bounds = array<i64: 1, 4>}, {transform_indices = @transform_5, window_bounds = array<i64: 8, 4>}]} {
    %c0 = arith.constant 0 : index
    %c0_0 = arith.constant 0 : index
    %0 = vector.load %arg1[%c0, %c0_0] : memref<8x16xf32, #tpu.memory_space<vmem>>, vector<8x16xf32>
    %1 = arith.truncf %0 : vector<8x16xf32> to vector<8x16xbf16>
    %c0_1 = arith.constant 0 : index
    %c0_2 = arith.constant 0 : index
    %2 = vector.load %arg2[%c0_1, %c0_2] : memref<16x64xbf16, #tpu.memory_space<vmem>>, vector<16x64xbf16>
    %cst = arith.constant dense<0.000000e+00> : vector<8x64xf32>
    %3 = tpu.matmul %1, %2, %cst {dimension_numbers = #tpu.dot_dimension_numbers<[1], [0], [0], [1], [0, 0, 1, 1], [], []>} : vector<8x16xbf16>, vector<16x64xbf16>, vector<8x64xf32> -> vector<8x64xf32>
    %c0_3 = arith.constant 0 : index
    %c0_4 = arith.constant 0 : index
    %4 = vector.load %arg3[%c0_3, %c0_4] : memref<1x64xf32, #tpu.memory_space<vmem>>, vector<1x64xf32>
    %5 = vector.broadcast %4 : vector<1x64xf32> to vector<8x64xf32>
    %6 = arith.addf %3, %5 : vector<8x64xf32>
    %cst_5 = arith.constant 0.000000e+00 : f32
    %7 = vector.broadcast %cst_5 : f32 to vector<8x64xf32>
    %8 = arith.maximumf %6, %7 : vector<8x64xf32>
    %9 = arith.truncf %8 : vector<8x64xf32> to vector<8x64xbf16>
    %c0_6 = arith.constant 0 : index
    %c0_7 = arith.constant 0 : index
    %10 = vector.load %arg4[%c0_6, %c0_7] : memref<64x4xbf16, #tpu.memory_space<vmem>>, vector<64x4xbf16>
    %cst_8 = arith.constant dense<0.000000e+00> : vector<8x4xf32>
    %11 = tpu.matmul %9, %10, %cst_8 {dimension_numbers = #tpu.dot_dimension_numbers<[1], [0], [0], [1], [0, 0, 1, 1], [], []>} : vector<8x64xbf16>, vector<64x4xbf16>, vector<8x4xf32> -> vector<8x4xf32>
    %c0_9 = arith.constant 0 : index
    %c0_10 = arith.constant 0 : index
    %12 = vector.load %arg5[%c0_9, %c0_10] : memref<1x4xf32, #tpu.memory_space<vmem>>, vector<1x4xf32>
    %13 = vector.broadcast %12 : vector<1x4xf32> to vector<8x4xf32>
    %14 = arith.addf %11, %13 : vector<8x4xf32>
    %c0_11 = arith.constant 0 : index
    %c0_12 = arith.constant 0 : index
    %15 = vector.load %arg6[%c0_11, %c0_12] : memref<8x4xf32, #tpu.memory_space<vmem>>, vector<8x4xf32>
    tpu.vector_store %arg6[%c0_11, %c0_12], %14 {strides = array<i32>} : memref<8x4xf32, #tpu.memory_space<vmem>>, vector<8x4xf32>,
    return
  }
  func.func @transform_0(%arg0: i32) -> (i32, i32) {
    %c0_i32 = arith.constant 0 : i32
    %c0_i32_0 = arith.constant 0 : i32
    return %arg0, %c0_i32 : i32, i32
  }
  func.func @transform_1(%arg0: i32) -> (i32, i32) {
    %c0_i32 = arith.constant 0 : i32
    %c0_i32_0 = arith.constant 0 : i32
    %c0_i32_1 = arith.constant 0 : i32
    return %c0_i32, %c0_i32_0 : i32, i32
  }
  func.func @transform_2(%arg0: i32) -> (i32, i32) {
    %c0_i32 = arith.constant 0 : i32
    %c0_i32_0 = arith.constant 0 : i32
    %c0_i32_1 = arith.constant 0 : i32
    return %c0_i32, %c0_i32_0 : i32, i32
  }
  func.func @transform_3(%arg0: i32) -> (i32, i32) {
    %c0_i32 = arith.constant 0 : i32
    %c0_i32_0 = arith.constant 0 : i32
    %c0_i32_1 = arith.constant 0 : i32
    return %c0_i32, %c0_i32_0 : i32, i32
  }
  func.func @transform_4(%arg0: i32) -> (i32, i32) {
    %c0_i32 = arith.constant 0 : i32
    %c0_i32_0 = arith.constant 0 : i32
    %c0_i32_1 = arith.constant 0 : i32
    return %c0_i32, %c0_i32_0 : i32, i32
  }
  func.func @transform_5(%arg0: i32) -> (i32, i32) {
    %c0_i32 = arith.constant 0 : i32
    %c0_i32_0 = arith.constant 0 : i32
    return %arg0, %c0_i32 : i32, i32
  }
}

</mosaic_0001>

<bundles_post_ra>
// kernel: tpu_custom_call.1
= control target key start
LH: loop header
LB: loop body
LE: loop exit
PB: predicated region body
PF: predicated region fallthrough
CT: control target
= control target key end

     0   :  { %vm35_vm0 = vcmask 130048   ;;  %vm90_vm1 = vcmask 523264   ;;  %vm107_vm2 = vcmask 31744   ;;  %s199_s1 = inlined_call_operand.vmem [shape: bf16[16,64], index: 1, kind: input, shape index: {}]   ;;  %s200_s0 = inlined_call_operand.vmem [shape: f32[8,16], index: 0, kind: input, shape index: {}]   ;;  %s201_s3 = inlined_call_operand.vmem [shape: bf16[64,4], index: 3, kind: input, shape index: {}]   ;;  %s202_s2 = inlined_call_operand.vmem [shape: f32[1,64], index: 2, kind: input, shape index: {}]   ;;  %s203_s4 = inlined_call_operand.vmem [shape: f32[1,4], index: 4, kind: input, shape index: {}]   ;;  %s204_s5 = inlined_call_operand.vmem [shape: f32[8,4], index: 5, kind: output, shape index: {}]  }
   0x1   :  { %v135_v0 = vld [vmem:[%s199_s1] sm:$0xff]  ;;  %v139_v2 = vld [vmem:[%s201_s3 + $0x18] sm:$0xff]  ;;  %v138_v4 = vld [vmem:[%s201_s3 + $0x10] sm:$0xff] }
   0x2   :  { %v21_v1 = vld [vmem:[%s200_s0] sm:$0xff]  ;;  %46 = vmatpush.bf16.msra.mxu0 %v135_v0  ;;  %98 = vmatpush.bf16.msra.mxu1 %v139_v2  ;;  %v137_v5 = vld [vmem:[%s201_s3 + $0x8] sm:$0xff] }
   0x3   :  { %v22_v3 = vpack.c.bf16 %v21_v1, %v21_v1  ;;  %v136_v6 = vld [vmem:[%s201_s3] sm:$0xff] }
   0x4   :  { %v140_v7 = vld [vmem:[%s202_s2] ss:$0 sm:$0xff] }
   0x5   :  { %117 = vmatmul.msk.bf16.vlgmr.msra.gmra.mxu0 %vm35_vm0, %v22_v3  ;;  %v141_v13 = vld [vmem:[%s203_s4] ss:$0 sm:$0xff] }
   0x6   :  { %99 = vmatpush.bf16.msra.mxu1 %v138_v4 }
   0xa   :  { %100 = vmatpush.bf16.msra.mxu1 %v137_v5 }
   0xe   :  { %101 = vmatpush.bf16.msra.mxu1 %v136_v6 }
  0x82   :  { %v48_v8 = vpop.f32.mrf.mxu0 }
  0x83   :  { %v49_v9 = vadd.f32 %v140_v7, %v48_v8 }
  0x85   :  { %v52_v10 = vmax.f32 %v49_v9, 0.0 }
  0x87   :  { %v53_v11 = vpack.c.bf16 %v52_v10, %v52_v10 }
  0x89   :  { %134 = vmatmul.msk.bf16.vlgmr.msra.gmra.mxu1 %vm90_vm1, %v53_v11 }
  0x8a   :  { %v50_v12 = vpop.f32.mrf.mxu0 }
 0x106   :  { %v103_v14 = vpop.f32.mrf.mxu1 }
 0x107   :  { %v104_v15 = vadd.f32 %v141_v13, %v103_v14 }
 0x109   :  { %108 = vst.msk [vmem:[%s204_s5] sm:$0xff] %vm107_vm2, %v104_v15 }
 0x10e   :  { %v105_v16 = vpop.f32.mrf.mxu1 }

</bundles_post_ra>
